<compile_context>
chip_gen: v7x
topology: tpu7x:2x2x1
jax: 0.10.0
libtpu: 0.0.40
codegen_flags: <defaults>
</compile_context>

<pallas_src>
import functools

import jax
import jax.numpy as jnp
from jax import lax
from jax.experimental import pallas as pl
from jax.experimental.pallas import tpu as pltpu

_NEG_BIG = 1e30   # finite "-inf" for masking (exp underflows to exactly 0, no NaNs)


# ---------------------------------------------------------------------------
# VMEM / tile sizing helpers (generation-aware)
# ---------------------------------------------------------------------------

@functools.lru_cache(maxsize=None)
def _vmem_limit_bytes():
    cap = 64 * 1024 * 1024
    try:
        info = pltpu.get_tpu_info()
        cap = int(getattr(info, "vmem_capacity_bytes", cap) or cap)
    except Exception:
        pass
    # Leave headroom for compiler-internal scratch; cap the request sensibly.
    return max(32 << 20, min((cap * 3) // 4, 100 << 20))


def _row_tile(n, d, row_tile=None):
    if row_tile is None:
        # ~8 MiB per buffer on 128-MiB-VMEM chips (v5e/v6e), ~4 MiB on v7x.
        target = (8 << 20) if _vmem_limit_bytes() >= (80 << 20) else (4 << 20)
        tm = target // (4 * max(d, 1))
    else:
        tm = int(row_tile)
    tm = max(8, (tm // 8) * 8)                       # sublane granule
    # Keep >= 2 row blocks when possible so both v7x TensorCores get work.
    half = ((-(-n // 2)) + 7) // 8 * 8
    return max(8, min(tm, half))


# ---------------------------------------------------------------------------
# Row-tiled elementwise kernels: LN / PN / PN-SI / PN-SCS
# ---------------------------------------------------------------------------

def _ln_kernel(x_ref, o_ref):
    # x = x - x.mean(dim=1); x = F.normalize(x, dim=1)   (eps=1e-12 on the norm)
    x = x_ref[...].astype(jnp.float32)
    x = x - jnp.mean(x, axis=1, keepdims=True)
    inv = lax.rsqrt(jnp.maximum(jnp.sum(x * x, axis=1, keepdims=True), 1e-24))
    o_ref[...] = (x * inv).astype(o_ref.dtype)


def _pn_kernel(x_ref, cm_ref, fac_ref, o_ref):
    # PN: out = (x - col_mean) * (scale / rownorm_mean); fac is a SMEM scalar.
    x = x_ref[...].astype(jnp.float32)
    fac = fac_ref[0, 0]
    o_ref[...] = ((x - cm_ref[...]) * fac).astype(o_ref.dtype)


def _pn_si_kernel(x_ref, cm_ref, o_ref, *, scale):
    x = x_ref[...].astype(jnp.float32) - cm_ref[...]
    inv = lax.rsqrt(1e-6 + jnp.sum(x * x, axis=1, keepdims=True))
    o_ref[...] = (scale * x * inv).astype(o_ref.dtype)


def _pn_scs_kernel(x_ref, cm_ref, o_ref, *, scale):
    x = x_ref[...].astype(jnp.float32)
    inv = lax.rsqrt(1e-6 + jnp.sum(x * x, axis=1, keepdims=True))
    o_ref[...] = (scale * x * inv - cm_ref[...]).astype(o_ref.dtype)


def _row_call(kernel, x, extras, extra_specs, row_tile=None):
    n, d = x.shape
    tm = _row_tile(n, d, row_tile)
    return pl.pallas_call(
        kernel,
        out_shape=jax.ShapeDtypeStruct(x.shape, x.dtype),
        grid=(pl.cdiv(n, tm),),
        in_specs=[pl.BlockSpec((tm, d), lambda i: (i, 0))] + list(extra_specs),
        out_specs=pl.BlockSpec((tm, d), lambda i: (i, 0)),
        compiler_params=pltpu.CompilerParams(
            dimension_semantics=("parallel",),
            vmem_limit_bytes=_vmem_limit_bytes(),
        ),
    )(x, *extras)


# ---------------------------------------------------------------------------
# Fused PairNorm statistics: column sums + total sum-of-squares in ONE pass
# ---------------------------------------------------------------------------

def _pn_stats_kernel(x_ref, colsum_ref, ssq_ref, *, n, tm):
    i = pl.program_id(0)
    x = x_ref[...].astype(jnp.float32)
    if n % tm != 0:  # static: mask garbage rows in the partial last tile
        row = i * tm + lax.broadcasted_iota(jnp.int32, (x.shape[0], 1), 0)
        x = jnp.where(row < n, x, 0.0)

    cs = jnp.sum(x, axis=0, keepdims=True)                       # (1, D)
    rs = jnp.sum(x * x, axis=1, keepdims=True)                   # (TM, 1)
    ss = jnp.sum(rs, axis=0, keepdims=True)                      # (1, 1)

    @pl.when(i == 0)
    def _init():
        colsum_ref[...] = jnp.zeros_like(colsum_ref)
        ssq_ref[...] = jnp.zeros_like(ssq_ref)

    colsum_ref[...] += cs
    ssq_ref[...] += ss


def _pn_stats(x, row_tile=None):
    n, d = x.shape
    tm = _row_tile(n, d, row_tile)
    kernel = functools.partial(_pn_stats_kernel, n=n, tm=tm)
    return pl.pallas_call(
        kernel,
        out_shape=(jax.ShapeDtypeStruct((1, d), jnp.float32),
                   jax.ShapeDtypeStruct((1, 1), jnp.float32)),
        grid=(pl.cdiv(n, tm),),
        in_specs=[pl.BlockSpec((tm, d), lambda i: (i, 0))],
        out_specs=(pl.BlockSpec((1, d), lambda i: (0, 0)),
                   pl.BlockSpec((1, 1), lambda i: (0, 0))),
        compiler_params=pltpu.CompilerParams(
            dimension_semantics=("arbitrary",),   # accumulator outputs
            vmem_limit_bytes=_vmem_limit_bytes(),
        ),
    )(x)


# ---------------------------------------------------------------------------
# ContraNorm: streamed (flash-style) masked softmax over the N x N similarity
# ---------------------------------------------------------------------------

def _cn_kernel(xq_ref, nxk_ref, normk_ref, adj_ref, o_ref,
               m_sc, l_sc, acc_sc, nq_sc, *, scale, tau):
    kv = pl.program_id(1)

    @pl.when(kv == 0)
    def _init():
        m_sc[...] = jnp.full(m_sc.shape, -jnp.inf, jnp.float32)
        l_sc[...] = jnp.zeros(l_sc.shape, jnp.float32)
        acc_sc[...] = jnp.zeros(acc_sc.shape, jnp.float32)
        # Query-side normalization hoisted out of the kv loop (done once per qi).
        xq = xq_ref[...].astype(jnp.float32)
        inv_q = lax.rsqrt(jnp.maximum(jnp.sum(xq * xq, axis=1, keepdims=True),
                                      1e-24))
        nq_sc[...] = (xq * inv_q).astype(jnp.bfloat16)

    nk = nxk_ref[...]          # (TK, D) bf16, pre-normalized keys (zero rows = padding)
    normk = normk_ref[...]     # (1, TK) f32 per-key row norms, 0 marks padded keys

    # sim = norm_x @ norm_x.T / tau  -- transpose-free, bf16 MXU, f32 accumulate.
    sim = lax.dot_general(nq_sc[...], nk, (((1,), (1,)), ((), ())),
                          preferred_element_type=jnp.float32) * (1.0 / tau)

    # masked_fill(adj > 1e-5, -inf) using a large finite negative (exp -> exactly
    # 0).  Spurious mass picked up while a row is still fully masked is wiped by
    # the online-softmax alpha rescale once a real entry appears.  normk == 0
    # also masks padded key columns (and OOB adjacency garbage in the edge tile).
    masked = jnp.logical_or(adj_ref[...] > 1e-5, normk == 0.0)
    sim = jnp.where(masked, -_NEG_BIG, sim)

    # Online softmax accumulation over the streamed kv tiles.
    m_new = jnp.maximum(m_sc[...], jnp.max(sim, axis=1, keepdims=True))
    alpha = jnp.exp(m_sc[...] - m_new)
    p = jnp.exp(sim - m_new)
    l_sc[...] = alpha * l_sc[...] + jnp.sum(p, axis=1, keepdims=True)
    # sim @ x  ==  (p * diag(rn)) @ nx   since x_j = rn_j * nx_j
    acc_sc[...] = alpha * acc_sc[...] + lax.dot_general(
        (p * normk).astype(jnp.bfloat16), nk,
        (((1,), (0,)), ((), ())), preferred_element_type=jnp.float32)
    m_sc[...] = m_new

    @pl.when(kv == pl.num_programs(1) - 1)
    def _finalize():
        x_neg = acc_sc[...] * pl.reciprocal(l_sc[...], approx=True)
        xq = xq_ref[...].astype(jnp.float32)
        o_ref[...] = ((1.0 + scale) * xq - scale * x_neg).astype(o_ref.dtype)


def _cn_tiles(n, d, x_itemsize, tq, tk):
    # q tile: sublane granule 8, default 512, capped at ~N/2 so the "parallel"
    # qi axis always has >= 2 blocks (keeps v7x's second TensorCore busy).
    half = ((-(-n // 2)) + 7) // 8 * 8
    tq = 512 if tq is None else int(tq)
    tq = max(8, min((tq // 8) * 8, half))
    # k tile: lane granule 128 (default 512, a multiple of 256 for v6e/v7x MXU);
    # covers all keys when the graph is small.
    tk = 512 if tk is None else int(tk)
    if tk >= n:
        tk = n
    else:
        tk = max(128, (tk // 128) * 128)

    # Shrink (rarely needed, e.g. very large D) until double-buffered tiles fit.
    budget = int(_vmem_limit_bytes() * 0.8)

    def vmem(tq_, tk_):
        return (4 * tq_ * d * x_itemsize        # x query in + out (double-buffered)
                + 2 * tk_ * d * 2               # bf16 key tiles (double-buffered)
                + 2 * tq_ * tk_ * 4             # f32 adjacency tiles
                + tq_ * d * 4 + tq_ * d * 2     # acc + nq scratch
                + 2 * tk_ * 4 + 4 * tq_ * 4)    # norms + m/l scratch

    while vmem(tq, tk) > budget and tq > 64:
        tq = max(64, ((tq // 2) // 8) * 8)
    while vmem(tq, tk) > budget and tk > 128 and tk < n:
        tk = max(128, ((tk // 2) // 128) * 128)
    return tq, tk


def _contra_norm(x, adj, scale, tau, *, tq=None, tk=None):
    n, d = x.shape
    assert adj.shape == (n, n), "ContraNorm needs a dense [N, N] adjacency"
    if adj.dtype != jnp.float32:
        adj = adj.astype(jnp.float32)
    tq, tk = _cn_tiles(n, d, jnp.dtype(x.dtype).itemsize, tq, tk)
    npad = ((n + tk - 1) // tk) * tk

    # Pre-normalize ONCE:  x_i = rn_i * nx_i  (nx in bf16).  Streaming bf16 keys
    # halves the dominant key-side HBM traffic and removes the per-kv-step key
    # normalization; padded rows carry rn == 0 which doubles as the padding mask.
    x32 = x.astype(jnp.float32)
    sq = jnp.sum(x32 * x32, axis=1, keepdims=True)
    rn = jnp.maximum(jnp.sqrt(sq), 1e-12)
    nx = (x32 * (1.0 / rn)).astype(jnp.bfloat16)
    if npad > n:
        nx = jnp.pad(nx, ((0, npad - n), (0, 0)))
        rn = jnp.pad(rn, ((0, npad - n), (0, 0)))
    norms_row = rn.reshape(1, npad)

    kernel = functools.partial(_cn_kernel, scale=float(scale), tau=float(tau))
    return pl.pallas_call(
        kernel,
        out_shape=jax.ShapeDtypeStruct(x.shape, x.dtype),
        grid=(pl.cdiv(n, tq), npad // tk),
        in_specs=[
            pl.BlockSpec((tq, d), lambda qi, kv: (qi, 0)),     # query rows (resident per qi)
            pl.BlockSpec((tk, d), lambda qi, kv: (kv, 0)),     # normalized bf16 keys (streamed)
            pl.BlockSpec((1, tk), lambda qi, kv: (0, kv)),     # per-key norms (0 => padded)
            pl.BlockSpec((tq, tk), lambda qi, kv: (qi, kv)),   # raw f32 adjacency tile
        ],
        out_specs=pl.BlockSpec((tq, d), lambda qi, kv: (qi, 0)),
        scratch_shapes=[
            pltpu.VMEM((tq, 1), jnp.float32),    # running row max
            pltpu.VMEM((tq, 1), jnp.float32),    # running softmax denominator
            pltpu.VMEM((tq, d), jnp.float32),    # running numerator
            pltpu.VMEM((tq, d), jnp.bfloat16),   # normalized query rows (hoisted)
        ],
        compiler_params=pltpu.CompilerParams(
            dimension_semantics=("parallel", "arbitrary"),
            vmem_limit_bytes=_vmem_limit_bytes(),
        ),
    )(x, nx, norms_row, adj)


# ---------------------------------------------------------------------------
# Public wrapper: mirrors NormLayer(norm_mode, norm_scale).forward(x, adj, tau)
# ---------------------------------------------------------------------------

def norm_layer_forward(x, norm_mode, norm_scale, adj=None, tau=1.0,
                       *, row_tile=None, cn_tq=None, cn_tk=None):
    assert x.ndim == 2, "NormLayer expects a 2-D [N, D] feature matrix"
    if norm_mode == "None":
        return x
    scale = float(norm_scale)

    if norm_mode == "LN":
        return _row_call(_ln_kernel, x, (), (), row_tile)

    if norm_mode == "CN":
        assert adj is not None, "ContraNorm ('CN') requires an adjacency matrix"
        return _contra_norm(x, adj, scale, tau, tq=cn_tq, tk=cn_tk)

    assert norm_mode in ("PN", "PN-SI", "PN-SCS"), norm_mode
    n, d = x.shape
    # One fused streaming pass over x for all cross-row statistics.
    colsum, ssq = _pn_stats(x, row_tile)
    cm = colsum * (1.0 / n)                                       # (1, D) f32
    cm_spec = pl.BlockSpec((1, d), lambda i: (0, 0))

    if norm_mode == "PN":
        # mean_i ||x_i - cm||^2 == mean_i ||x_i||^2 - ||cm||^2  (no xc pass)
        var_mean = ssq[0, 0] * (1.0 / n) - jnp.sum(cm * cm)
        rownorm_mean = jnp.sqrt(1e-6 + jnp.maximum(var_mean, 0.0))
        fac = (scale / rownorm_mean).astype(jnp.float32).reshape(1, 1)
        fac_spec = pl.BlockSpec(memory_space=pltpu.MemorySpace.SMEM)
        return _row_call(_pn_kernel, x, (cm, fac), (cm_spec, fac_spec), row_tile)
    if norm_mode == "PN-SI":
        return _row_call(functools.partial(_pn_si_kernel, scale=scale),
                         x, (cm,), (cm_spec,), row_tile)
    return _row_call(functools.partial(_pn_scs_kernel, scale=scale),
                     x, (cm,), (cm_spec,), row_tile)


# ---------------------------------------------------------------------------
# Pure-JAX reference (mirrors the PyTorch forward) + demo
# ---------------------------------------------------------------------------

def _reference(x, mode, scale, adj=None, tau=1.0):
    x = x.astype(jnp.float32)
    if mode == "None":
        return x
    if mode == "LN":
        x = x - x.mean(axis=1, keepdims=True)
        x = x / jnp.maximum(jnp.linalg.norm(x, axis=1, keepdims=True), 1e-12)
    col_mean = x.mean(axis=0)
    if mode == "PN":
        x = x - col_mean
        rn = jnp.sqrt(1e-6 + (x ** 2).sum(axis=1).mean())
        x = scale * x / rn
    if mode == "CN":
        nx = x / jnp.maximum(jnp.linalg.norm(x, axis=1, keepdims=True), 1e-12)
        sim = nx @ nx.T / tau
        sim = jnp.where(adj > 1e-5, -jnp.inf, sim)
        sim = jax.nn.softmax(sim, axis=1)
        x = (1 + scale) * x - scale * (sim @ x)
    if mode == "PN-SI":
        x = x - col_mean
        rn = jnp.sqrt(1e-6 + (x ** 2).sum(axis=1, keepdims=True))
        x = scale * x / rn
    if mode == "PN-SCS":
        rn = jnp.sqrt(1e-6 + (x ** 2).sum(axis=1, keepdims=True))
        x = scale * x / rn - col_mean
    return x


def _make_adj(key, n, thr):
    a = (jax.random.uniform(key, (n, n)) > thr).astype(jnp.float32)
    return jnp.maximum(a, a.T) * (1.0 - jnp.eye(n, dtype=jnp.float32))


if __name__ == "__main__":
    key = jax.random.PRNGKey(0)
    kx, ka, kx2, ka2, kx3, ka3 = jax.random.split(key, 6)
    norm_scale = 1.0

    # Small shapes consistent with the module: N nodes x D features.
    N, D = 16, 32
    x = jax.random.normal(kx, (N, D), dtype=jnp.float32)
    adj = _make_adj(ka, N, 0.6)

    checks = []
    for mode in ("None", "LN", "PN", "PN-SI", "PN-SCS"):
        checks.append((mode, norm_layer_forward(x, mode, norm_scale),
                       _reference(x, mode, norm_scale), 1e-4))
    checks.append(("CN", norm_layer_forward(x, "CN", norm_scale, adj=adj, tau=1.0),
                   _reference(x, "CN", norm_scale, adj=adj, tau=1.0), 1e-1))

    # Larger config exercising the multi-tile streamed paths
    # (CN: 2x2 q/kv grid with online softmax; PN-SI: 4 row tiles).
    N2, D2 = 256, 32
    x2 = jax.random.normal(kx2, (N2, D2), dtype=jnp.float32)
    adj2 = _make_adj(ka2, N2, 0.8)
    checks.append(("CN-tiled",
                   norm_layer_forward(x2, "CN", norm_scale, adj=adj2, tau=1.0,
                                      cn_tq=128, cn_tk=128),
                   _reference(x2, "CN", norm_scale, adj=adj2, tau=1.0), 1e-1))
    checks.append(("PN-SI-tiled",
                   norm_layer_forward(x2, "PN-SI", norm_scale, row_tile=64),
                   _reference(x2, "PN-SI", norm_scale), 1e-4))

    # Ragged config (N not a multiple of the tiles): exercises zero-norm padded
    # key masking and partial q/adj edge tiles.
    N3, D3 = 200, 32
    x3 = jax.random.normal(kx3, (N3, D3), dtype=jnp.float32)
    adj3 = _make_adj(ka3, N3, 0.7)
    checks.append(("CN-ragged",
                   norm_layer_forward(x3, "CN", norm_scale, adj=adj3, tau=1.0,
                                      cn_tq=64, cn_tk=128),
                   _reference(x3, "CN", norm_scale, adj=adj3, tau=1.0), 1e-1))

    for mode, out, ref, tol in checks:
        out = jax.block_until_ready(out)
        err = float(jnp.max(jnp.abs(out.astype(jnp.float32) - ref)))
        assert err < tol, f"{mode}: max abs err {err} >= {tol}"

    print("KERNEL_OK")
</pallas_src>

<mosaic_0001>
module attributes {stable_mosaic.version = 11 : i64} {
  func.func @_ln_kernel(%arg0: i32, %arg1: memref<8x32xf32, #tpu.memory_space<vmem>>, %arg2: memref<8x32xf32, #tpu.memory_space<vmem>>) attributes {dimension_semantics = [#tpu.dimension_semantics<parallel>], iteration_bounds = array<i64: 2>, scalar_prefetch = 0 : i64, scratch_operands = 0 : i64, tpu.core_type = #tpu.core_type<tc>, window_params = [{transform_indices = @transform_0, window_bounds = array<i64: 8, 32>}, {transform_indices = @transform_1, window_bounds = array<i64: 8, 32>}]} {
    %c0 = arith.constant 0 : index
    %c0_0 = arith.constant 0 : index
    %0 = vector.load %arg1[%c0, %c0_0] : memref<8x32xf32, #tpu.memory_space<vmem>>, vector<8x32xf32>
    %cst = arith.constant dense<0.000000e+00> : vector<8xf32>
    %1 = vector.multi_reduction <add>, %0, %cst [1] : vector<8x32xf32> to vector<8xf32>
    %2 = vector.shape_cast %1 : vector<8xf32> to vector<8x1xf32>
    %cst_1 = arith.constant 3.200000e+01 : f32
    %3 = vector.broadcast %cst_1 : f32 to vector<8x1xf32>
    %4 = arith.divf %2, %3 : vector<8x1xf32>
    %5 = vector.broadcast %4 : vector<8x1xf32> to vector<8x32xf32>
    %6 = arith.subf %0, %5 : vector<8x32xf32>
    %7 = arith.mulf %6, %6 : vector<8x32xf32>
    %cst_2 = arith.constant dense<0.000000e+00> : vector<8xf32>
    %8 = vector.multi_reduction <add>, %7, %cst_2 [1] : vector<8x32xf32> to vector<8xf32>
    %9 = vector.shape_cast %8 : vector<8xf32> to vector<8x1xf32>
    %cst_3 = arith.constant 1.000000e-24 : f32
    %10 = vector.broadcast %cst_3 : f32 to vector<8x1xf32>
    %11 = arith.maximumf %9, %10 : vector<8x1xf32>
    %12 = math.rsqrt %11 : vector<8x1xf32>
    %13 = vector.broadcast %12 : vector<8x1xf32> to vector<8x32xf32>
    %14 = arith.mulf %6, %13 : vector<8x32xf32>
    %c0_4 = arith.constant 0 : index
    %c0_5 = arith.constant 0 : index
    %15 = vector.load %arg2[%c0_4, %c0_5] : memref<8x32xf32, #tpu.memory_space<vmem>>, vector<8x32xf32>
    tpu.vector_store %arg2[%c0_4, %c0_5], %14 {strides = array<i32>} : memref<8x32xf32, #tpu.memory_space<vmem>>, vector<8x32xf32>,
    return
  }
  func.func @transform_0(%arg0: i32) -> (i32, i32) {
    %c0_i32 = arith.constant 0 : i32
    %c0_i32_0 = arith.constant 0 : i32
    return %arg0, %c0_i32 : i32, i32
  }
  func.func @transform_1(%arg0: i32) -> (i32, i32) {
    %c0_i32 = arith.constant 0 : i32
    %c0_i32_0 = arith.constant 0 : i32
    return %arg0, %c0_i32 : i32, i32
  }
}

</mosaic_0001>

<bundles_post_ra>
// kernel: tpu_custom_call.1
= control target key start
LH: loop header
LB: loop body
LE: loop exit
PB: predicated region body
PF: predicated region fallthrough
CT: control target
= control target key end

     0   :  { %6 = vsyncpa [#allocation3], 0  ;;  %s566_s0 = inlined_call_operand.hbm [shape: f32[16,32], index: 0, kind: input, shape index: {}]   ;;  %s567_s1 = inlined_call_operand.hbm [shape: f32[16,32], index: 1, kind: output, shape index: {}]  }
   0x1   :  { %8 = vsyncpa [#allocation3 + $0x1], 0 }
   0x2   :  { %9 = vsyncpa [#allocation4], 0 }
   0x3   :  { %11 = vsyncpa [#allocation4 + $0x1], 0  ;;  %s402_s6 = smov 0   ;;  %s404_s7 = smov 0  }
   0x4   :  { %s406_s8 = smov 0   ;;  %s408_s9 = smov 0  }
   0x5 LB: > { %s423_s10 = sadd.s32 4294967295, %s388_s9   ;;  %s232_s11 = sadd.s32 4294967294, %s388_s9   ;;  %s388_s9 = sphi %s408_s9, %s582_s9   ;;  %s384_s8 = sphi %s406_s8, %s581_s8   ;;  %s380_s7 = sphi %s404_s7, %s580_s7   ;;  %s376_s6 = sphi %s402_s6, %s579_s6  }
   0x6   : > { %s427_s12 = sadd.s32 1, %s388_s9   ;;  %s24_s13 = sadd.s32 1, %s384_s8 }
   0x7   : > { %s21_s14 = ssub.s32 %s388_s9, %s427_s12  ;;  %p31_p0 = scmp.ne.s32.totalorder %s384_s8, %s380_s7 }
   0x8   : > { %p22_p1 = scmp.eq.s32.totalorder %s21_s14, 0  ;;  %p32_p2 = scmp.eq.s32.totalorder %s388_s9, 0 }
   0x9   : > { %p37_p3 = scmp.ne.s32.totalorder %s380_s7, %s376_s6  ;;  %p38_p4 = scmp.eq.s32.totalorder %s423_s10, 0 }
   0xa   : > { %s439_s15 = scalar_select %p22_p1, %s384_s8, %s24_s13  }
   0xb   : > { %p441_p5 = por %p32_p2, %p31_p0  ;;  %p445_p6 = por %p38_p4, %p37_p3 }
   0xc   : > { %p61_p7 = scmp.eq.s32.totalorder %s423_s10, 1  ;;  %p67_p8 = scmp.eq.s32.totalorder %s232_s11, 1 }
   0xd   : > { %p256_p10 = scmp.lt.s32.totalorder %s388_s9, 2  ;;  %s87_s20 = sand.u32 1, %s384_s8  }
   0xe   : > { %p452_p11 = por %p61_p7, %p31_p0  ;;  %p456_p12 = por %p67_p8, %p37_p3 }
   0xf   : > { %s236_s21 = sshll.u32 %s388_s9, 7  ;;  %s235_s22 = sshll.u32 %s87_s20, 3 }
  0x10   : > { %s571_s18 = scalar_select %p452_p11, 1, 0 }
  0x11   : > { %s572_s19 = scalar_select %p456_p12, 1, 0 }
  0x12   : > { %s465_s25 = scalar_lea.hbm %s566_s0, %s236_s21  ;;  %s91_s26 = scalar_lea.vmem [#allocation2], %s235_s22 }
  0x13   : > { %s98_s27 = sshll.u32 %s91_s26, 4  ;;  %p469_p13 = pnand %p256_p10, %p441_p5  ;;  %s473_s27 = int_to_ptr.vmem [resolvable:$true] %s98_s27 }
  0x14   : > { %s88_s29 = scalar_lea.sflag [#allocation3], %s87_s20  ;;  %s292_s30 = scalar_lea.hbm %s465_s25, 128 }
  0x15   : > { %p293_p2 = scmp.ne.s32.totalorder %s465_s25, %s292_s30  ;;  %p294_p3 = pneg %p469_p13 }
  0x16   : > { %s297_s4 = scalar_lea.hbm %s566_s0, 256  ;;  %p298_p5 = scmp.lt.u32.totalorder %s465_s25, %s566_s0 }
  0x17   : > { %p295_p4 = pnand %p294_p3, %p293_p2  ;;  %p299_p8 = scmp.lt.u32.totalorder %s297_s4, %s292_s30 }
  0x18   : > { %p301_p9 = scmp.lt.u32.totalorder %s292_s30, %s465_s25 }
  0x19   : > { %p296_p7 = pneg %p295_p4  ;;  %p300_p10 = por %p299_p8, %p298_p5 }
  0x1b   : > { %p302_p0 = por %p301_p9, %p300_p10 }
  0x1d   : > { %p303_p1 = pnand %p302_p0, %p296_p7 }
  0x1f   : > { %306 = shalt.err (!%p303_p1)
}
  0x20   : > { %s307_s13 = scalar_lea.vmem %s473_s27, 128  ;;  %s390_s14 = smov [#allocation2]  }
  0x21   : > { %p308_p2 = scmp.ne.s32.totalorder %s473_s27, %s307_s13  ;;  %s312_s16 = sshll.u32 %s390_s14, 4  ;;  %s313_s16 = int_to_ptr.vmem [resolvable:$false] %s312_s16 }
  0x22   : > { %s314_s20 = scalar_lea.vmem %s313_s16, 256  ;;  %p315_p11 = scmp.lt.s32.totalorder %s473_s27, %s313_s16 }
  0x23   : > { %p310_p4 = pnand %p308_p2, %p294_p3  ;;  %p316_p5 = scmp.lt.s32.totalorder %s314_s20, %s307_s13 }
  0x25   : > { %p311_p12 = pneg %p310_p4  ;;  %p317_p8 = por %p316_p5, %p315_p11 }
  0x27   : > { %p318_p9 = pnand %p317_p8, %p311_p12 }
  0x29   : > { %321 = shalt.err (!%p318_p9)
}
  0x2a   : > { %251 = dma.hbm_to_vmem [thread:$0]  (!%p469_p13), %s465_s25, 128, %s473_s27, %s88_s29  }
  0x2b   : > { %p574_p0 = scmp.lt.s32.totalorder %s388_s9, 3  ;;  %p575_p1 = scmp.ge.s32.totalorder %s388_s9, 1 }
  0x2d   : > { %p104_p3 = pnand %p575_p1, %p574_p0 }
  0x2e   : > { %s507_s21 = sand.u32 (!%p104_p3), 1, %s380_s7  }
  0x2f   : > { %107 = sbr.rel (%p104_p3) target bundleno = 377 (0x179), region = 24  ;;  %s238_s22 = sshll.u32 (!%p104_p3), %s507_s21, 3 }
  0x30   : > { %s110_s23 = scalar_lea.sflag (!%p104_p3), [#allocation3], %s507_s21  ;;  %s113_s24 = scalar_lea.vmem (!%p104_p3), [#allocation2], %s238_s22 }
  0x36   : > { %367 = dma.done.wait (%p445_p6), %s110_s23, 128  }
  0x37   : > { %369 = vsyncadd (%p445_p6), %s110_s23, 4294967168  ;;  %vm133_vm0 = vcmask 261120   ;;  %v132_v0 = vld [vmem:[%s113_s24] sm:$0xff]  ;;  %s241_s17 = sshll.u32 %s423_s10, 7  ;;  %s131_s25 = scalar_lea.vmem [#allocation5], %s238_s22 }
  0x38   : > { %v134_v1 = vsel %vm133_vm0, %v132_v0, 0.0  ;;  %s162_s26 = sshll.u32 %s131_s25, 4  ;;  %s521_s29 = scalar_lea.hbm %s567_s1, %s241_s17  ;;  %s523_s26 = int_to_ptr.vmem [resolvable:$true] %s162_s26 }
  0x39   : > { %135 = vadd.xlane.f32.xlu0 %v134_v1  ;;  %s149_s30 = scalar_lea.sflag [#allocation4], %s507_s21  ;;  %s322_s2 = scalar_lea.vmem %s523_s26, 128 }
  0x3a   : > { %p323_p6 = scmp.ne.s32.totalorder %s523_s26, %s322_s2  ;;  %p576_p11 = scmp.ne.s32.totalorder %s571_s18, 0 }
  0x3b   : > { %s391_s10 = smov [#allocation5]  }
  0x3c   : > { %p324_p12 = pnand %p323_p6, %p576_p11  ;;  %s326_s3 = sshll.u32 %s391_s10, 4  ;;  %s327_s3 = int_to_ptr.vmem [resolvable:$false] %s326_s3 }
  0x3d   : > { %s328_s4 = scalar_lea.vmem %s327_s3, 256  ;;  %p329_p7 = scmp.lt.s32.totalorder %s523_s26, %s327_s3 }
  0x3e   : > { %p325_p13 = pneg %p324_p12  ;;  %p330_p10 = scmp.lt.s32.totalorder %s328_s4, %s322_s2 }
  0x40   : > { %p331_p2 = por %p330_p10, %p329_p7 }
  0x42   : > { %p332_p4 = pnand %p331_p2, %p325_p13 }
  0xc6   : > { %v136_v2 = vpop.xlane.xlu0 %135 }
  0xc7   : > { %v138_v3 = vmul.f32 0.03125, %v136_v2 }
  0xc9   : > { %v139_v4 = vsub.f32 %v132_v0, %v138_v3 }
  0xcb   : > { %v140_v5 = vmul.f32 %v139_v4, %v139_v4 }
  0xcd   : > { %v141_v6 = vsel %vm133_vm0, %v140_v5, 0.0 }
  0xce   : > { %142 = vadd.xlane.f32.xlu0 %v141_v6 }
 0x15b   : > { %v143_v7 = vpop.xlane.xlu0 %142 }
 0x15c   : > { %v144_v8 = vmax.f32 %v143_v7, 1e-24 }
 0x15e   : > { %290 = vrsqrt.f32 %v144_v8 }
 0x168   : > { %v291_v9 = vpop.eup %290 }
 0x169   : > { %v146_v10 = vmul.f32 %v291_v9, %v139_v4 }
 0x16b   : > { %147 = vst.msk [vmem:[%s131_s25] sm:$0xff] %vm133_vm0, %v146_v10 }
 0x16c   : > { %335 = shalt.err (!%p332_p4)
}
 0x16d   : > { %s336_s5 = scalar_lea.hbm %s521_s29, 128  ;;  %s340_s14 = scalar_lea.hbm %s567_s1, 256 }
 0x16e   : > { %p337_p5 = scmp.ne.s32.totalorder %s521_s29, %s336_s5  ;;  %p341_p0 = scmp.lt.u32.totalorder %s521_s29, %s567_s1 }
 0x16f   : > { %p342_p1 = scmp.lt.u32.totalorder %s340_s14, %s336_s5  ;;  %p344_p6 = scmp.lt.u32.totalorder %s336_s5, %s521_s29 }
 0x170   : > { %p338_p8 = pnand %p337_p5, %p576_p11 }
 0x171   : > { %p343_p3 = por %p342_p1, %p341_p0 }
 0x172   : > { %p339_p9 = pneg %p338_p8 }
 0x173   : > { %p345_p12 = por %p344_p6, %p343_p3 }
 0x175   : > { %p346_p13 = pnand %p345_p12, %p339_p9 }
 0x177   : > { %349 = shalt.err (!%p346_p13)
}
 0x178   : > { %246 = dma.vmem_to_hbm [thread:$0]  (%p576_p11), %s523_s26, 128, %s521_s29, %s149_s30  }
 0x179 PF: > { %s174_s21 = sand.u32 1, %s376_s6   ;;  %p577_p7 = scmp.ne.s32.totalorder %s572_s19, 0 }
 0x17a   : > { %p578_p10 = scmp.ge.s32.totalorder %s388_s9, 2  ;;  %s175_s22 = scalar_lea.sflag [#allocation4], %s174_s21 }
 0x17c   : > { %p253_p2 = pnand %p578_p10, %p577_p7 }
 0x17e   : > { %371 = dma.done.wait (!%p253_p2), %s175_s22, 128  }
 0x17f   : > { %373 = vsyncadd (!%p253_p2), %s175_s22, 4294967168  ;;  %p14_p4 = scmp.ge.s32.totalorder %s427_s12, 4   ;;  %s579_s6 = smov %s380_s7 }
 0x180   : > { %s580_s7 = smov %s384_s8  ;;  %s581_s8 = smov %s439_s15 }
 0x181   : > { %s582_s9 = smov %s427_s12  ;;  %16 = sbr.rel (!%p14_p4) target bundleno = 5 (0x5), region = 69 }
 0x188   :  { %180 = vsyncpa [#allocation3], 1 }
 0x189   :  { %182 = vsyncpa [#allocation3 + $0x1], 1 }
 0x18a   :  { %183 = vsyncpa [#allocation4], 1 }
 0x18b   :  { %185 = vsyncpa [#allocation4 + $0x1], 1 }

</bundles_post_ra>
